<compile_context>
chip_gen: v6e
topology: v6e:2x2x1
jax: 0.10.0
libtpu: 0.0.40
codegen_flags: <defaults>
</compile_context>

<pallas_src>
import functools
import math

import jax
import jax.numpy as jnp
from jax.experimental import pallas as pl
from jax.experimental.pallas import tpu as pltpu


# --------------------------------------------------------------------------------------
# Kernels
# --------------------------------------------------------------------------------------
def _matmul_kernel_acc(x_ref, w_ref, o_ref, acc_ref):
    """Multi-k-step matmul: accumulate in f32 VMEM scratch, finalize on last k step."""
    @pl.when(pl.program_id(2) == 0)
    def _():
        acc_ref[...] = jnp.zeros_like(acc_ref)

    acc_ref[...] += jnp.dot(
        x_ref[...], w_ref[...], preferred_element_type=jnp.float32
    )

    @pl.when(pl.program_id(2) == pl.num_programs(2) - 1)
    def _():
        o_ref[...] = acc_ref[...].astype(o_ref.dtype)


def _matmul_kernel_single_k(x_ref, w_ref, o_ref):
    """K fits a single tile: write the MXU result straight to the output block."""
    o_ref[...] = jnp.dot(
        x_ref[...], w_ref[...], preferred_element_type=jnp.float32
    ).astype(o_ref.dtype)


# --------------------------------------------------------------------------------------
# Device / tiling heuristics
# --------------------------------------------------------------------------------------
def _round_up(x, m):
    return ((x + m - 1) // m) * m


@functools.lru_cache(maxsize=1)
def _device_vmem_bytes():
    """Physical VMEM capacity; conservative (v7x per-TC) fallback if the query fails."""
    try:
        info = pltpu.get_tpu_info()
        vmem = getattr(info, "vmem_capacity_bytes", None)
        if vmem:
            return int(vmem)
    except Exception:
        pass
    return 64 * 1024 * 1024


def _select_config(M, K, N, dtype):
    """Pick (tm, tn, tk, Mp, Kp, Np, vmem_limit) for the given problem + device.

    - Defaults sized for f32 and scaled by 4/itemsize for narrower dtypes.
    - 128 MiB-VMEM parts (v5e/v6e) get larger tiles and a 96 MiB scoped-VMEM limit.
    - 64 MiB-per-TC parts (v7x) keep a 48 MiB limit; if the parallel grid would be
      1x1, the N axis is split so both TensorCores get work.
    - N is always padded to a lane-dense multiple of 128.
    """
    itemsize = jnp.dtype(dtype).itemsize
    scale = max(1, 4 // itemsize)  # same byte budget -> larger tiles for bf16/int8
    vmem = _device_vmem_bytes()
    big_vmem = vmem >= 100 * 1024 * 1024  # v5e / v6e: 128 MiB.  v7x: 64 MiB per TC.

    if big_vmem:
        tm_d, tn_d, tk_d = 512 * scale, 2048, 1024 * scale
        vmem_limit = 96 * 1024 * 1024
    else:
        tm_d, tn_d, tk_d = 512 * scale, 1024, 512 * scale
        vmem_limit = 48 * 1024 * 1024

    # M (sublane dim of x and out): full-extent block when it fits -> no padding.
    if M <= tm_d:
        tm, Mp = M, M
    else:
        tm, Mp = tm_d, _round_up(M, tm_d)

    # K (contraction): keep x unpadded along K whenever one tile covers it.
    if K <= tk_d:
        tk, Kp = K, K
    else:
        tk, Kp = tk_d, _round_up(K, tk_d)

    # N (lane dim of the output): always lane-dense (multiple of 128).
    Np = _round_up(N, 128)
    if Np <= tn_d:
        tn = Np  # whole-N tile -> x is streamed exactly once
    else:
        tn = tn_d
        Np = _round_up(N, tn_d)

    # v7x-style parts: two TensorCores share the chip.  If the parallel grid would be
    # 1x1, split N so both cores get a column block (only when it stays lane-dense).
    if not big_vmem and (Mp // tm) * (Np // tn) == 1 and Np >= 256 and Np % 256 == 0:
        tn = Np // 2

    return tm, tn, tk, Mp, Kp, Np, vmem_limit


# --------------------------------------------------------------------------------------
# pallas_call wrapper
# --------------------------------------------------------------------------------------
@functools.partial(
    jax.jit, static_argnames=("tm", "tn", "tk", "Mp", "Kp", "Np", "vmem_limit")
)
def _linear_with_mm_impl(x, w, *, tm, tn, tk, Mp, Kp, Np, vmem_limit):
    M, K = x.shape
    _, N = w.shape

    # Zero-pad to tile multiples (padded rows/cols/contractions contribute zero).
    # Both pads are conditional; aligned shapes pay nothing.  Callers that control the
    # weight layout can pre-pad w once at init time to skip the w pad entirely.
    if (Mp, Kp) != (M, K):
        x = jnp.pad(x, ((0, Mp - M), (0, Kp - K)))
    if (Kp, Np) != (K, N):
        w = jnp.pad(w, ((0, Kp - K), (0, Np - N)))

    grid = (Mp // tm, Np // tn, Kp // tk)
    single_k = grid[2] == 1

    if single_k:
        kernel = _matmul_kernel_single_k
        scratch_shapes = []
    else:
        kernel = _matmul_kernel_acc
        scratch_shapes = [pltpu.VMEM((tm, tn), jnp.float32)]

    itemsize = jnp.dtype(x.dtype).itemsize
    bytes_accessed = (
        Mp * Kp * itemsize * grid[1]   # x re-streamed once per output-column block
        + Kp * Np * itemsize * grid[0] # w re-streamed once per output-row block
        + Mp * Np * itemsize           # output written once
    )

    out_padded = pl.pallas_call(
        kernel,
        out_shape=jax.ShapeDtypeStruct((Mp, Np), x.dtype),
        grid_spec=pltpu.PrefetchScalarGridSpec(
            num_scalar_prefetch=0,
            grid=grid,
            in_specs=[
                pl.BlockSpec((tm, tk), lambda i, j, k: (i, k)),
                pl.BlockSpec((tk, tn), lambda i, j, k: (k, j)),
            ],
            out_specs=pl.BlockSpec((tm, tn), lambda i, j, k: (i, j)),
            scratch_shapes=scratch_shapes,
        ),
        compiler_params=pltpu.CompilerParams(
            dimension_semantics=("parallel", "parallel", "arbitrary"),
            vmem_limit_bytes=vmem_limit,
        ),
        cost_estimate=pl.CostEstimate(
            flops=2 * Mp * Np * Kp,
            bytes_accessed=bytes_accessed,
            transcendentals=0,
        ),
    )(x, w)

    if (Mp, Np) != (M, N):
        out_padded = out_padded[:M, :N]
    return out_padded


def linear_with_mm(x, w):
    """out = x @ w on the MXU via a tiled, pipelined Pallas kernel.

    x: (batch, in_features), w: (in_features, out_features) -> (batch, out_features).
    """
    assert x.ndim == 2 and w.ndim == 2, (x.shape, w.shape)
    M, K = x.shape
    K2, N = w.shape
    assert K == K2, (K, K2)
    # torch.mm requires matching dtypes; avoid silent promotion changing semantics.
    assert x.dtype == w.dtype, (x.dtype, w.dtype)

    tm, tn, tk, Mp, Kp, Np, vmem_limit = _select_config(M, K, N, x.dtype)
    return _linear_with_mm_impl(
        x, w, tm=tm, tn=tn, tk=tk, Mp=Mp, Kp=Kp, Np=Np, vmem_limit=vmem_limit
    )


# --------------------------------------------------------------------------------------
# Parameter init mirroring the PyTorch module's reset_parameters
# --------------------------------------------------------------------------------------
def init_params(key, in_features, out_features, dtype=jnp.float32):
    """kaiming_uniform_(weight, a=sqrt(5)) on a (in_features, out_features) tensor:
      fan_in (PyTorch convention: size of dim 1) = out_features
      bound = 1 / sqrt(fan_in)
    Bias is initialized by the module but unused in forward; kept only for parity.
    """
    kw, kb = jax.random.split(key)
    bound_w = 1.0 / math.sqrt(out_features)
    weight = jax.random.uniform(
        kw, (in_features, out_features), dtype=dtype, minval=-bound_w, maxval=bound_w
    )
    bound_b = 1.0 / math.sqrt(in_features)
    bias = jax.random.uniform(
        kb, (out_features,), dtype=dtype, minval=-bound_b, maxval=bound_b
    )
    return weight, bias


if __name__ == "__main__":
    key = jax.random.PRNGKey(0)
    k_x, k_p, k_x2, k_w2 = jax.random.split(key, 4)

    # --- Small demo shapes consistent with the module (single-k fast path) ---
    batch, in_features, out_features = 8, 32, 32
    x = jax.random.normal(k_x, (batch, in_features), dtype=jnp.float32)
    weight, _bias = init_params(k_p, in_features, out_features)

    out = jax.block_until_ready(linear_with_mm(x, weight))
    ref = x @ weight
    assert out.shape == (batch, out_features)
    assert jnp.allclose(out, ref, atol=1e-5, rtol=1e-5), "small-shape mismatch vs reference"

    # --- Modest tiled-path check: multi-k accumulation + lane-dense N padding/slicing ---
    M2, K2, N2 = 128, 2048, 200  # K2 > tk on all generations; N2 padded to 256 lanes
    x2 = jax.random.normal(k_x2, (M2, K2), dtype=jnp.float32)
    w2 = jax.random.normal(k_w2, (K2, N2), dtype=jnp.float32)
    out2 = jax.block_until_ready(linear_with_mm(x2, w2))
    ref2 = x2 @ w2
    assert out2.shape == (M2, N2)
    assert jnp.allclose(out2, ref2, atol=2e-2, rtol=2e-2), "tiled-path mismatch vs reference"

    print("KERNEL_OK")
</pallas_src>

<mosaic_0001>
module attributes {stable_mosaic.version = 11 : i64} {
  func.func @_matmul_kernel_single_k(%arg0: i32, %arg1: i32, %arg2: i32, %arg3: memref<8x32xf32, #tpu.memory_space<vmem>>, %arg4: memref<32x128xf32, #tpu.memory_space<vmem>>, %arg5: memref<8x128xf32, #tpu.memory_space<vmem>>) attributes {dimension_semantics = [#tpu.dimension_semantics<parallel>, #tpu.dimension_semantics<parallel>, #tpu.dimension_semantics<arbitrary>], iteration_bounds = array<i64: 1, 1, 1>, scalar_prefetch = 0 : i64, scratch_operands = 0 : i64, tpu.core_type = #tpu.core_type<tc>, window_params = [{transform_indices = @transform_0, window_bounds = array<i64: 8, 32>}, {transform_indices = @transform_1, window_bounds = array<i64: 32, 128>}, {transform_indices = @transform_2, window_bounds = array<i64: 8, 128>}]} {
    %c0 = arith.constant 0 : index
    %c0_0 = arith.constant 0 : index
    %0 = vector.load %arg3[%c0, %c0_0] : memref<8x32xf32, #tpu.memory_space<vmem>>, vector<8x32xf32>
    %c0_1 = arith.constant 0 : index
    %c0_2 = arith.constant 0 : index
    %1 = vector.load %arg4[%c0_1, %c0_2] : memref<32x128xf32, #tpu.memory_space<vmem>>, vector<32x128xf32>
    %cst = arith.constant dense<0.000000e+00> : vector<8x128xf32>
    %2 = tpu.matmul %0, %1, %cst {dimension_numbers = #tpu.dot_dimension_numbers<[1], [0], [0], [1], [0, 0, 1, 1], [], []>} : vector<8x32xf32>, vector<32x128xf32>, vector<8x128xf32> -> vector<8x128xf32>
    %c0_3 = arith.constant 0 : index
    %c0_4 = arith.constant 0 : index
    %3 = vector.load %arg5[%c0_3, %c0_4] : memref<8x128xf32, #tpu.memory_space<vmem>>, vector<8x128xf32>
    tpu.vector_store %arg5[%c0_3, %c0_4], %2 {strides = array<i32>} : memref<8x128xf32, #tpu.memory_space<vmem>>, vector<8x128xf32>,
    return
  }
  func.func @transform_0(%arg0: i32, %arg1: i32, %arg2: i32) -> (i32, i32) {
    %c0_i32 = arith.constant 0 : i32
    return %arg0, %arg2 : i32, i32
  }
  func.func @transform_1(%arg0: i32, %arg1: i32, %arg2: i32) -> (i32, i32) {
    %c0_i32 = arith.constant 0 : i32
    return %arg2, %arg1 : i32, i32
  }
  func.func @transform_2(%arg0: i32, %arg1: i32, %arg2: i32) -> (i32, i32) {
    %c0_i32 = arith.constant 0 : i32
    return %arg0, %arg1 : i32, i32
  }
}

</mosaic_0001>

<bundles_post_ra>
// kernel: _linear_with_mm_impl.1
= control target key start
LH: loop header
LB: loop body
LE: loop exit
PB: predicated region body
PF: predicated region fallthrough
CT: control target
= control target key end

     0   :  { %v148_v1 = vmov 0.0   ;;  %vm149_vm0 = vmmov 0   ;;  %s184_s0 = inlined_call_operand.vmem [shape: f32[8,32], index: 0, kind: input, shape index: {}]   ;;  %s185_s1 = inlined_call_operand.vmem [shape: f32[32,128], index: 1, kind: input, shape index: {}]   ;;  %s186_s2 = inlined_call_operand.hbm [shape: f32[8,128], index: 2, kind: output, shape index: {}]  }
   0x1   :  { %v16_v0 = vld [vmem:[%s185_s1 + $0x18] sm:$0xff]  ;;  %112 = vmatprep.subr.mxu0 %v148_v1  ;;  %v15_v2 = vld [vmem:[%s185_s1 + $0x10] sm:$0xff]  ;;  %120 = vmatprep.mubr.msk.f32.mxu0 %vm149_vm0, %v148_v1 }
   0x2   :  { %7 = vsyncpa [#allocation3], 0  ;;  %113 = vmatpush3.msra.mxu0 %v16_v0  ;;  %v14_v3 = vld [vmem:[%s185_s1 + $0x8] sm:$0xff]  ;;  %v13_v4 = vld [vmem:[%s185_s1] sm:$0xff]  ;;  %vm17_vm1 = vcmask 261120   ;;  %s150_s19 = smov [#allocation2]  }
   0x3   :  { %114 = vmatprep.subr.mxu0 %v148_v1  ;;  %v12_v5 = vld [vmem:[%s184_s0] sm:$0xff]  ;;  %s98_s20 = sshll.u32 %s150_s19, 4  ;;  %s99_s20 = int_to_ptr.vmem [resolvable:$true] %s98_s20 }
   0x4   :  { %115 = vmatpush3.msra.mxu0 %v15_v2  ;;  %s126_s21 = scalar_lea.vmem %s99_s20, 128  ;;  %p131_p1 = scmp.lt.s32.totalorder %s99_s20, %s99_s20 }
   0x5   :  { %116 = vmatprep.subr.mxu0 %v148_v1  ;;  %p127_p0 = scmp.ne.s32.totalorder %s99_s20, %s126_s21  ;;  %p132_p2 = scmp.lt.s32.totalorder %s126_s21, %s126_s21 }
   0x6   :  { %117 = vmatpush3.msra.mxu0 %v14_v3 }
   0x7   :  { %118 = vmatprep.subr.mxu0 %v148_v1  ;;  %p133_p3 = por %p132_p2, %p131_p1 }
   0x8   :  { %119 = vmatpush3.msra.mxu0 %v13_v4 }
   0x9   :  { %121 = vmatmul.mubr.msk.f32.vlgmr.msra.gmra.mxu0 %vm17_vm1, %v12_v5  ;;  %p134_p4 = pnand %p133_p3, %p127_p0 }
  0xc9   :  { %v87_v6 = vpop.f32.mrf.mxu0 }
  0xca   :  { %91 = vst [vmem:[#allocation2] sm:$0xff] %v87_v6 }
  0xcb   :  { %v122_v7 = vpop.f32.mrf.mxu0 }
  0xcc   :  { %137 = shalt.err (!%p134_p4)
}
  0xcd   :  { %101 = dma.vmem_to_hbm [thread:$0]  %s99_s20, 128, %s186_s2, [#allocation3]  }
  0xce   :  { %146 = dma.done.wait [#allocation3], 128  }
  0xcf   :  { %147 = vsyncadd [#allocation3], 4294967168 }
  0xd0   :  { %105 = vsyncpa [#allocation3], 1 }

</bundles_post_ra>
